<compile_context>
chip_gen: v6e
topology: v6e:2x2x1
jax: 0.10.0
libtpu: 0.0.40
codegen_flags: <defaults>
</compile_context>

<pallas_src>
import functools
import math

import numpy as np
import jax
import jax.numpy as jnp
from jax.experimental import pallas as pl
from jax.experimental.pallas import tpu as pltpu


_NEG = -1e30          # large-negative sentinel (softmax math stays in f32)


# --------------------------------------------------------------------------
# VMEM-aware tiling helpers
# --------------------------------------------------------------------------
@functools.lru_cache(maxsize=None)
def _vmem_capacity_bytes():
    """Physical VMEM per TensorCore (128 MiB v5e/v6e, 64 MiB v7x)."""
    default = 64 * 1024 * 1024                    # conservative (v7x)
    try:
        info = pltpu.get_tpu_info()
    except Exception:
        return default
    for name in ("vmem_capacity_bytes", "vmem_size_bytes", "vmem_bytes"):
        val = getattr(info, name, None)
        try:
            val = int(val)
        except (TypeError, ValueError):
            continue
        if val > 0:
            return val
    return default


def _vmem_budget_bytes():
    # Target <= ~40% of physical VMEM live per grid step (~51 MiB on v5e/v6e,
    # ~25 MiB on v7x), leaving headroom for double-buffering and Mosaic scratch.
    return max(int(_vmem_capacity_bytes() * 0.4), 8 * 1024 * 1024)


def _vmem_limit_bytes():
    cap = _vmem_capacity_bytes()
    return int(max(min(int(cap * 0.85), cap - (8 << 20)), 32 << 20))


def _choose_k_tile(L_K, max_tk=512):
    """L_K tile for kernel A: must divide L_K and keep the lane dim of the
    (L_Q, tk) sample-bias block a multiple of 128 (or the full L_K)."""
    if L_K <= max_tk:
        return L_K
    start = max_tk - (max_tk % 128)
    for tk in range(start, 127, -128):
        if L_K % tk == 0:
            return tk
    return L_K        # no aligned divisor: fall back to the full reduction axis


def _choose_group_block(G, step_bytes_fn, budget_bytes,
                        target_steps=8, min_step_bytes=2 << 20):
    """Largest divisor of G whose per-step working set fits the VMEM budget,
    preferring enough grid steps for DMA/compute overlap & dual-TC sharding."""
    divisors = [d for d in range(1, G + 1) if G % d == 0]
    fit = [d for d in divisors if step_bytes_fn(d) <= budget_bytes]
    if not fit:
        return 1
    for d in reversed(fit):                       # enough steps, still meaty
        if G // d >= target_steps and step_bytes_fn(d) >= min_step_bytes:
            return d
    for d in reversed(fit):                       # keep both TensorCores busy
        if (G // d) >= 2 and (G // d) % 2 == 0:
            return d
    for d in reversed(fit):
        if G // d >= 2:
            return d
    return fit[-1]


def _kernel_a_step_bytes(g, L_Q, tk, D, cb):
    q_in = 2 * g * L_Q * D * cb                   # Q block (double buffered)
    k_in = 2 * g * tk * D * cb                    # K block
    bias = 2 * L_Q * tk * cb                      # shared sample-mask bias block
    qk = 2 * g * L_Q * tk * 4                     # f32 score tile (+ biased copy)
    out = 2 * g * L_Q * 4                         # running-max output block
    return q_in + k_in + bias + qk + out


def _kernel_b_step_bytes(g, L_Q, L_K, D, u, cb, mask_flag):
    qkv = 2 * g * (L_Q + 2 * L_K) * D * cb
    ctx0 = 2 * g * (L_Q if mask_flag else 1) * D * cb
    out = 2 * g * L_Q * D * cb
    onehots = g * (2 * L_Q * u) * cb + g * L_Q * u * 4
    scores = 3 * g * u * L_K * 4
    ctx = 2 * g * L_Q * D * 4
    upd = 2 * g * u * D * 4
    return qkv + ctx0 + out + onehots + scores + ctx + upd


# --------------------------------------------------------------------------
# Kernel A: running max_{sampled k} q.k over L_K tiles.
# The output block is revisited along the (last, "arbitrary") grid axis so it
# acts as the accumulator; -1e30 bias marks unsampled columns.
# --------------------------------------------------------------------------
def _qk_max_kernel(q_ref, k_ref, bias_ref, mx_ref):
    @pl.when(pl.program_id(1) == 0)
    def _init():
        mx_ref[...] = jnp.full_like(mx_ref, _NEG)

    qk = jnp.einsum('gld,gsd->gls', q_ref[...], k_ref[...],
                    preferred_element_type=jnp.float32)          # (g, L_Q, tk)
    qk = qk + bias_ref[...][None, :, :]
    mx_ref[...] = jnp.maximum(mx_ref[...],
                              jnp.max(qk, axis=-1, keepdims=True))


# --------------------------------------------------------------------------
# Kernel B: fused top-u attention + in-VMEM row scatter into the initial
# context (cumsum(V) / mean(V), streamed in from a cheap XLA op).
# --------------------------------------------------------------------------
def _ctx_kernel(q_ref, k_ref, v_ref, ctx0_ref, idx_ref, o_ref, *,
                scale, mask_flag):
    G, L_Q, D = q_ref.shape
    L_K = k_ref.shape[1]
    u = idx_ref.shape[2]

    q = q_ref[...]
    k = k_ref[...]
    v = v_ref[...]
    idx = idx_ref[...][:, 0, :]                                  # (G, u) int32

    # gather Q_reduce = onehot(idx) @ Q on the MXU (no data-dependent gather)
    sel_ul = (jax.lax.broadcasted_iota(jnp.int32, (G, u, L_Q), 2)
              == idx[:, :, None]).astype(q.dtype)
    q_red = jnp.einsum('gul,gld->gud', sel_ul, q,
                       preferred_element_type=jnp.float32).astype(q.dtype)

    # scores -> scale -> ProbMask -> f32 softmax (all VMEM-resident)
    scores = jnp.einsum('gud,gsd->gus', q_red, k,
                        preferred_element_type=jnp.float32) * scale
    if mask_flag:
        col = jax.lax.broadcasted_iota(jnp.int32, (G, u, L_K), 2)
        scores = jnp.where(col > idx[:, :, None], _NEG, scores)
    smax = jnp.max(scores, axis=-1, keepdims=True)
    e = jnp.exp(scores - smax)
    attn = e * pl.reciprocal(jnp.sum(e, axis=-1, keepdims=True), approx=True)

    upd = jnp.einsum('gus,gsd->gud', attn.astype(v.dtype), v,
                     preferred_element_type=jnp.float32)          # (G, u, D) f32

    # initial context (computed by XLA, streamed in)
    if mask_flag:
        ctx = ctx0_ref[...].astype(jnp.float32)                   # cumsum(V)
    else:
        ctx = jnp.broadcast_to(ctx0_ref[...].astype(jnp.float32), (G, L_Q, D))

    # scatter the u updated rows (top-k indices are unique)
    sel_lu = (jax.lax.broadcasted_iota(jnp.int32, (G, L_Q, u), 1)
              == idx[:, None, :]).astype(v.dtype)                 # (G, L_Q, u)
    hit = jnp.sum(sel_lu, axis=-1, keepdims=True)                 # 1.0 on top-u rows
    scattered = jnp.einsum('glu,gud->gld', sel_lu, upd.astype(v.dtype),
                           preferred_element_type=jnp.float32)
    o_ref[...] = jnp.where(hit > 0, scattered, ctx).astype(o_ref.dtype)


# --------------------------------------------------------------------------
# Wrapper
# --------------------------------------------------------------------------
@functools.partial(jax.jit,
                   static_argnames=("mask_flag", "factor", "scale",
                                    "compute_dtype", "max_k_tile",
                                    "return_internals"))
def prob_attention_forward(queries, keys, values, attn_mask=None, *,
                           mask_flag=True, factor=5, scale=None,
                           rng_key=None, compute_dtype=jnp.bfloat16,
                           max_k_tile=512, return_internals=False):
    """ProbAttention.forward.  queries: (B, L_Q, H, D), keys/values: (B, L_K, H, D).
    Returns (context (B, L_Q, H, D) in queries.dtype, None)."""
    del attn_mask                       # ProbAttention builds its own ProbMask
    B, L_Q, H, D = queries.shape
    L_K = keys.shape[1]
    if mask_flag:
        assert L_Q == L_K               # torch asserts L_Q == L_V in masked mode
    scale_val = float(scale) if scale is not None else 1.0 / math.sqrt(D)

    U_part = min(int(factor) * int(np.ceil(np.log(L_K))), L_K)
    u = min(int(factor) * int(np.ceil(np.log(L_Q))), L_Q)

    G = B * H
    cb = jnp.dtype(compute_dtype).itemsize

    # TODO(synk): feeding the kernels straight from the (B, L, H, D) layout
    # (4-D BlockSpecs) would drop these XLA transposes, but needs sub-8 blocks
    # on the H axis; kept as XLA glue (fused with the compute-dtype downcast).
    Q = jnp.transpose(queries, (0, 2, 1, 3)).reshape(G, L_Q, D)
    K = jnp.transpose(keys, (0, 2, 1, 3)).reshape(G, L_K, D)
    V = jnp.transpose(values, (0, 2, 1, 3)).reshape(G, L_K, D)
    Qc = Q.astype(compute_dtype)
    Kc = K.astype(compute_dtype)
    Vc = V.astype(compute_dtype)

    # TODO(synk): torch.randint's RNG stream cannot be reproduced bit-exactly; jax PRNG used.
    if rng_key is None:
        rng_key = jax.random.PRNGKey(0)
    index_sample = jax.random.randint(rng_key, (L_Q, U_part), 0, L_K)
    # counts[l, k] = #{s : index_sample[l, s] == k}  (duplicates counted, as torch)
    counts = jnp.sum(jax.nn.one_hot(index_sample, L_K, dtype=jnp.float32), axis=1)
    samp_bias = jnp.where(counts > 0, 0.0, _NEG).astype(compute_dtype)   # (L_Q, L_K)

    budget = _vmem_budget_bytes()
    vlimit = _vmem_limit_bytes()

    # ---- kernel A: masked max over sampled keys, L_K tiled -------------------
    tk = _choose_k_tile(L_K, max_k_tile)
    n_k = L_K // tk
    ga = _choose_group_block(
        G, lambda g: _kernel_a_step_bytes(g, L_Q, tk, D, cb), budget)
    qk_max = pl.pallas_call(
        _qk_max_kernel,
        out_shape=jax.ShapeDtypeStruct((G, L_Q, 1), jnp.float32),
        grid=(G // ga, n_k),
        in_specs=[pl.BlockSpec((ga, L_Q, D), lambda g, kk: (g, 0, 0)),
                  pl.BlockSpec((ga, tk, D), lambda g, kk: (g, kk, 0)),
                  pl.BlockSpec((L_Q, tk), lambda g, kk: (0, kk))],
        out_specs=pl.BlockSpec((ga, L_Q, 1), lambda g, kk: (g, 0, 0)),
        compiler_params=pltpu.CompilerParams(
            dimension_semantics=("parallel", "arbitrary"),
            vmem_limit_bytes=vlimit),
    )(Qc, Kc, samp_bias)

    # multiplicity-weighted mean term: a plain batched matmul, left to XLA/MXU
    k_weighted = jnp.einsum('lk,gkd->gld', counts.astype(compute_dtype), Kc,
                            preferred_element_type=jnp.float32)
    qk_sum = jnp.einsum('gld,gld->gl', Qc.astype(jnp.float32), k_weighted)
    M = qk_max[..., 0] - qk_sum * (1.0 / L_K)                        # (G, L_Q)

    # top-u query rows (tiny; sorted vs. unsorted irrelevant)
    M_top = jax.lax.top_k(M, u)[1].astype(jnp.int32)                 # (G, u)
    idx3 = M_top[:, None, :]                                         # (G, 1, u)

    # initial context: cumsum(V) (masked) or mean(V) — cheap O(G*L*D) XLA op
    if mask_flag:
        ctx0 = jnp.cumsum(V.astype(jnp.float32), axis=1).astype(compute_dtype)
        ctx0_block = None   # set below with gb
    else:
        ctx0 = jnp.mean(V.astype(jnp.float32), axis=1,
                        keepdims=True).astype(compute_dtype)         # (G, 1, D)

    # ---- kernel B: fused scores/mask/softmax/attn@V + in-VMEM scatter --------
    gb = _choose_group_block(
        G, lambda g: _kernel_b_step_bytes(g, L_Q, L_K, D, u, cb, mask_flag),
        budget)
    ctx0_block = (gb, L_Q, D) if mask_flag else (gb, 1, D)
    ctx = pl.pallas_call(
        functools.partial(_ctx_kernel, scale=scale_val, mask_flag=mask_flag),
        out_shape=jax.ShapeDtypeStruct((G, L_Q, D), compute_dtype),
        grid=(G // gb,),
        in_specs=[pl.BlockSpec((gb, L_Q, D), lambda g: (g, 0, 0)),
                  pl.BlockSpec((gb, L_K, D), lambda g: (g, 0, 0)),
                  pl.BlockSpec((gb, L_K, D), lambda g: (g, 0, 0)),
                  pl.BlockSpec(ctx0_block, lambda g: (g, 0, 0)),
                  pl.BlockSpec((gb, 1, u), lambda g: (g, 0, 0))],
        out_specs=pl.BlockSpec((gb, L_Q, D), lambda g: (g, 0, 0)),
        compiler_params=pltpu.CompilerParams(
            dimension_semantics=("parallel",),
            vmem_limit_bytes=vlimit),
    )(Qc, Kc, Vc, ctx0, idx3)

    out = jnp.transpose(ctx.reshape(B, H, L_Q, D),
                        (0, 2, 1, 3)).astype(queries.dtype)
    # TODO(synk): output_attention=True (dense attention-map return) not implemented.
    if return_internals:
        return out, None, {"index_sample": index_sample, "M": M, "M_top": M_top}
    return out, None


# --------------------------- pure-JAX reference ------------------------------

def _reference_M(queries, keys, index_sample):
    Q = jnp.transpose(queries, (0, 2, 1, 3)).astype(jnp.float32)
    K = jnp.transpose(keys, (0, 2, 1, 3)).astype(jnp.float32)
    L_K = K.shape[2]
    K_sample = K[:, :, index_sample, :]                              # (B,H,L_Q,U,D)
    QKs = jnp.einsum('bhld,bhlsd->bhls', Q, K_sample, precision='highest')
    M = jnp.max(QKs, axis=-1) - jnp.sum(QKs, axis=-1) / L_K
    return M.reshape(Q.shape[0] * Q.shape[1], -1)


def _reference_context(queries, keys, values, mask_flag, scale_val, M_top):
    B, L_Q, H, D = queries.shape
    L_K = keys.shape[1]
    Q = jnp.transpose(queries, (0, 2, 1, 3)).astype(jnp.float32)
    K = jnp.transpose(keys, (0, 2, 1, 3)).astype(jnp.float32)
    V = jnp.transpose(values, (0, 2, 1, 3)).astype(jnp.float32)
    idx = M_top.reshape(B, H, -1)
    Q_red = jnp.take_along_axis(Q, idx[..., None], axis=2)
    scores = jnp.einsum('bhud,bhsd->bhus', Q_red, K, precision='highest') * scale_val
    if mask_flag:
        msk = jnp.arange(L_K)[None, None, None, :] > idx[..., None]
        scores = jnp.where(msk, -jnp.inf, scores)
    attn = jax.nn.softmax(scores, axis=-1)
    if mask_flag:
        ctx = jnp.cumsum(V, axis=2)
    else:
        ctx = jnp.broadcast_to(jnp.mean(V, axis=2, keepdims=True), (B, H, L_Q, D))
    upd = jnp.einsum('bhus,bhsd->bhud', attn, V, precision='highest')
    bi = jnp.arange(B)[:, None, None]
    hi = jnp.arange(H)[None, :, None]
    ctx = ctx.at[bi, hi, idx].set(upd)
    return jnp.transpose(ctx, (0, 2, 1, 3))


# ---------------------------------- main -------------------------------------

if __name__ == "__main__":
    B, H, D = 2, 4, 32
    root = jax.random.PRNGKey(0)
    kq, kk_, kv, kq2, kk2, kv2, kq3, kk3, kv3, kr = jax.random.split(root, 10)

    # -- case 1: masked self-attention, f32 kernels vs pure-JAX reference ------
    L = 16
    q = jax.random.normal(kq, (B, L, H, D), jnp.float32)
    k = jax.random.normal(kk_, (B, L, H, D), jnp.float32)
    v = jax.random.normal(kv, (B, L, H, D), jnp.float32)

    out_f32, _, aux = prob_attention_forward(
        q, k, v, mask_flag=True, factor=5, rng_key=kr,
        compute_dtype=jnp.float32, return_internals=True)
    out_f32 = jax.block_until_ready(out_f32)

    m_ref = _reference_M(q, k, aux["index_sample"])
    m_err = float(jnp.max(jnp.abs(aux["M"] - m_ref)))
    assert bool(jnp.allclose(aux["M"], m_ref, rtol=5e-2, atol=5e-2)), m_err

    ctx_ref = _reference_context(q, k, v, True, 1.0 / math.sqrt(D), aux["M_top"])
    c_err = float(jnp.max(jnp.abs(out_f32 - ctx_ref)))
    assert bool(jnp.allclose(out_f32, ctx_ref, rtol=5e-2, atol=5e-2)), c_err

    # -- case 2: longer masked case forcing the tiled L_K reduction path -------
    L2 = 256
    q3 = jax.random.normal(kq3, (B, L2, H, D), jnp.float32)
    k3 = jax.random.normal(kk3, (B, L2, H, D), jnp.float32)
    v3 = jax.random.normal(kv3, (B, L2, H, D), jnp.float32)
    out3, _, aux3 = prob_attention_forward(
        q3, k3, v3, mask_flag=True, factor=5, rng_key=kr,
        compute_dtype=jnp.float32, max_k_tile=128, return_internals=True)
    out3 = jax.block_until_ready(out3)
    m_ref3 = _reference_M(q3, k3, aux3["index_sample"])
    assert bool(jnp.allclose(aux3["M"], m_ref3, rtol=5e-2, atol=5e-2))
    ctx_ref3 = _reference_context(q3, k3, v3, True, 1.0 / math.sqrt(D),
                                  aux3["M_top"])
    assert bool(jnp.allclose(out3, ctx_ref3, rtol=5e-2, atol=5e-2))

    # -- case 3: cross-attention style (mask_flag=False, L_Q != L_K), f32 ------
    L_q2, L_k2 = 12, 16
    q2 = jax.random.normal(kq2, (B, L_q2, H, D), jnp.float32)
    k2 = jax.random.normal(kk2, (B, L_k2, H, D), jnp.float32)
    v2 = jax.random.normal(kv2, (B, L_k2, H, D), jnp.float32)
    out2, _, aux2 = prob_attention_forward(
        q2, k2, v2, mask_flag=False, factor=5, rng_key=kr,
        compute_dtype=jnp.float32, return_internals=True)
    out2 = jax.block_until_ready(out2)
    m_ref2 = _reference_M(q2, k2, aux2["index_sample"])
    assert bool(jnp.allclose(aux2["M"], m_ref2, rtol=5e-2, atol=5e-2))
    ctx_ref2 = _reference_context(q2, k2, v2, False, 1.0 / math.sqrt(D),
                                  aux2["M_top"])
    assert bool(jnp.allclose(out2, ctx_ref2, rtol=5e-2, atol=5e-2))

    # -- perf-default path: bf16 MXU operands ----------------------------------
    out_bf, attn = prob_attention_forward(q, k, v, mask_flag=True, factor=5,
                                          rng_key=kr)
    out_bf = jax.block_until_ready(out_bf)
    assert attn is None
    assert out_bf.shape == (B, L, H, D), out_bf.shape
    assert bool(jnp.all(jnp.isfinite(out_bf)))

    out_xb, _ = prob_attention_forward(q2, k2, v2, mask_flag=False, factor=5,
                                       rng_key=kr)
    out_xb = jax.block_until_ready(out_xb)
    assert out_xb.shape == (B, L_q2, H, D), out_xb.shape
    assert bool(jnp.all(jnp.isfinite(out_xb)))

    print("KERNEL_OK")
</pallas_src>

<mosaic_0001>
module attributes {stable_mosaic.version = 11 : i64} {
  func.func @_qk_max_kernel(%arg0: i32, %arg1: i32, %arg2: memref<4x16x32xf32, #tpu.memory_space<vmem>>, %arg3: memref<4x16x32xf32, #tpu.memory_space<vmem>>, %arg4: memref<16x16xf32, #tpu.memory_space<vmem>>, %arg5: memref<4x16x1xf32, #tpu.memory_space<vmem>>) attributes {dimension_semantics = [#tpu.dimension_semantics<parallel>, #tpu.dimension_semantics<arbitrary>], iteration_bounds = array<i64: 2, 1>, scalar_prefetch = 0 : i64, scratch_operands = 0 : i64, tpu.core_type = #tpu.core_type<tc>, window_params = [{transform_indices = @transform_0, window_bounds = array<i64: 4, 16, 32>}, {transform_indices = @transform_1, window_bounds = array<i64: 4, 16, 32>}, {transform_indices = @transform_2, window_bounds = array<i64: 16, 16>}, {transform_indices = @transform_3, window_bounds = array<i64: 4, 16, 1>}]} {
    %c0_i32 = arith.constant 0 : i32
    %0 = arith.cmpi eq, %arg1, %c0_i32 : i32
    %1 = arith.extui %0 : i1 to i32
    %c0_i32_0 = arith.constant 0 : i32
    %2 = arith.cmpi ne, %1, %c0_i32_0 : i32
    scf.if %2 {
      %cst_15 = arith.constant -1.000000e+30 : f32
      %15 = vector.broadcast %cst_15 : f32 to vector<4x16x1xf32>
      %c0_16 = arith.constant 0 : index
      %c0_17 = arith.constant 0 : index
      %c0_18 = arith.constant 0 : index
      %16 = vector.load %arg5[%c0_16, %c0_17, %c0_18] : memref<4x16x1xf32, #tpu.memory_space<vmem>>, vector<4x16x1xf32>
      tpu.vector_store %arg5[%c0_16, %c0_17, %c0_18], %15 {strides = array<i32>} : memref<4x16x1xf32, #tpu.memory_space<vmem>>, vector<4x16x1xf32>,
    } else {
    }
    %c0 = arith.constant 0 : index
    %c0_1 = arith.constant 0 : index
    %c0_2 = arith.constant 0 : index
    %3 = vector.load %arg2[%c0, %c0_1, %c0_2] : memref<4x16x32xf32, #tpu.memory_space<vmem>>, vector<4x16x32xf32>
    %c0_3 = arith.constant 0 : index
    %c0_4 = arith.constant 0 : index
    %c0_5 = arith.constant 0 : index
    %4 = vector.load %arg3[%c0_3, %c0_4, %c0_5] : memref<4x16x32xf32, #tpu.memory_space<vmem>>, vector<4x16x32xf32>
    "tpu.trace_start"() <{level = 10 : i32, message = "gld,gsd->gls"}> : () -> ()
    %cst = arith.constant dense<0.000000e+00> : vector<4x16x16xf32>
    %5 = tpu.matmul %3, %4, %cst {dimension_numbers = #tpu.dot_dimension_numbers<[2], [2], [1], [1], [0, 0, 0, 1, 1, 1], [0], [0]>} : vector<4x16x32xf32>, vector<4x16x32xf32>, vector<4x16x16xf32> -> vector<4x16x16xf32>
    "tpu.trace_stop"() : () -> ()
    %c0_6 = arith.constant 0 : index
    %c0_7 = arith.constant 0 : index
    %6 = vector.load %arg4[%c0_6, %c0_7] : memref<16x16xf32, #tpu.memory_space<vmem>>, vector<16x16xf32>
    %7 = vector.shape_cast %6 : vector<16x16xf32> to vector<1x16x16xf32>
    %8 = vector.broadcast %7 : vector<1x16x16xf32> to vector<4x16x16xf32>
    %9 = arith.addf %5, %8 : vector<4x16x16xf32>
    %c0_8 = arith.constant 0 : index
    %c0_9 = arith.constant 0 : index
    %c0_10 = arith.constant 0 : index
    %10 = vector.load %arg5[%c0_8, %c0_9, %c0_10] : memref<4x16x1xf32, #tpu.memory_space<vmem>>, vector<4x16x1xf32>
    %cst_11 = arith.constant dense<0xFF800000> : vector<4x16xf32>
    %11 = vector.multi_reduction <maximumf>, %9, %cst_11 [2] : vector<4x16x16xf32> to vector<4x16xf32>
    %12 = vector.shape_cast %11 : vector<4x16xf32> to vector<4x16x1xf32>
    %13 = arith.maximumf %10, %12 : vector<4x16x1xf32>
    %c0_12 = arith.constant 0 : index
    %c0_13 = arith.constant 0 : index
    %c0_14 = arith.constant 0 : index
    %14 = vector.load %arg5[%c0_12, %c0_13, %c0_14] : memref<4x16x1xf32, #tpu.memory_space<vmem>>, vector<4x16x1xf32>
    tpu.vector_store %arg5[%c0_12, %c0_13, %c0_14], %13 {strides = array<i32>} : memref<4x16x1xf32, #tpu.memory_space<vmem>>, vector<4x16x1xf32>,
    return
  }
  func.func @transform_0(%arg0: i32, %arg1: i32) -> (i32, i32, i32) {
    %c0_i32 = arith.constant 0 : i32
    %c0_i32_0 = arith.constant 0 : i32
    %c0_i32_1 = arith.constant 0 : i32
    return %arg0, %c0_i32, %c0_i32_0 : i32, i32, i32
  }
  func.func @transform_1(%arg0: i32, %arg1: i32) -> (i32, i32, i32) {
    %c0_i32 = arith.constant 0 : i32
    %c0_i32_0 = arith.constant 0 : i32
    return %arg0, %arg1, %c0_i32 : i32, i32, i32
  }
  func.func @transform_2(%arg0: i32, %arg1: i32) -> (i32, i32) {
    %c0_i32 = arith.constant 0 : i32
    %c0_i32_0 = arith.constant 0 : i32
    return %c0_i32, %arg1 : i32, i32
  }
  func.func @transform_3(%arg0: i32, %arg1: i32) -> (i32, i32, i32) {
    %c0_i32 = arith.constant 0 : i32
    %c0_i32_0 = arith.constant 0 : i32
    %c0_i32_1 = arith.constant 0 : i32
    return %arg0, %c0_i32, %c0_i32_0 : i32, i32, i32
  }
}

module attributes {stable_mosaic.version = 11 : i64} {
  func.func @_ctx_kernel(%arg0: i32, %arg1: memref<4x16x32xf32, #tpu.memory_space<vmem>>, %arg2: memref<4x16x32xf32, #tpu.memory_space<vmem>>, %arg3: memref<4x16x32xf32, #tpu.memory_space<vmem>>, %arg4: memref<4x16x32xf32, #tpu.memory_space<vmem>>, %arg5: memref<4x1x15xi32, #tpu.memory_space<vmem>>, %arg6: memref<4x16x32xf32, #tpu.memory_space<vmem>>) attributes {dimension_semantics = [#tpu.dimension_semantics<parallel>], iteration_bounds = array<i64: 2>, scalar_prefetch = 0 : i64, scratch_operands = 0 : i64, tpu.core_type = #tpu.core_type<tc>, window_params = [{transform_indices = @transform_0, window_bounds = array<i64: 4, 16, 32>}, {transform_indices = @transform_1, window_bounds = array<i64: 4, 16, 32>}, {transform_indices = @transform_2, window_bounds = array<i64: 4, 16, 32>}, {transform_indices = @transform_3, window_bounds = array<i64: 4, 16, 32>}, {transform_indices = @transform_4, window_bounds = array<i64: 4, 1, 15>}, {transform_indices = @transform_5, window_bounds = array<i64: 4, 16, 32>}]} {
    %c0 = arith.constant 0 : index
    %c0_0 = arith.constant 0 : index
    %c0_1 = arith.constant 0 : index
    %0 = vector.load %arg1[%c0, %c0_0, %c0_1] : memref<4x16x32xf32, #tpu.memory_space<vmem>>, vector<4x16x32xf32>
    %c0_2 = arith.constant 0 : index
    %c0_3 = arith.constant 0 : index
    %c0_4 = arith.constant 0 : index
    %1 = vector.load %arg2[%c0_2, %c0_3, %c0_4] : memref<4x16x32xf32, #tpu.memory_space<vmem>>, vector<4x16x32xf32>
    %c0_5 = arith.constant 0 : index
    %c0_6 = arith.constant 0 : index
    %c0_7 = arith.constant 0 : index
    %2 = vector.load %arg3[%c0_5, %c0_6, %c0_7] : memref<4x16x32xf32, #tpu.memory_space<vmem>>, vector<4x16x32xf32>
    %c0_8 = arith.constant 0 : index
    %c0_9 = arith.constant 0 : index
    %c0_10 = arith.constant 0 : index
    %3 = vector.load %arg5[%c0_8, %c0_9, %c0_10] : memref<4x1x15xi32, #tpu.memory_space<vmem>>, vector<4x1x15xi32>
    %4 = vector.shape_cast %3 : vector<4x1x15xi32> to vector<4x15xi32>
    %5 = tpu.iota {dimensions = array<i32: 2>} : vector<4x15x16xi32>
    %6 = vector.shape_cast %4 : vector<4x15xi32> to vector<4x15x1xi32>
    %7 = vector.broadcast %6 : vector<4x15x1xi32> to vector<4x15x16xi32>
    %8 = arith.cmpi eq, %5, %7 : vector<4x15x16xi32>
    %9 = arith.extui %8 : vector<4x15x16xi1> to vector<4x15x16xi32>
    %10 = arith.sitofp %9 : vector<4x15x16xi32> to vector<4x15x16xf32>
    "tpu.trace_start"() <{level = 10 : i32, message = "gul,gld->gud"}> : () -> ()
    %cst = arith.constant dense<0.000000e+00> : vector<4x15x32xf32>
    %11 = tpu.matmul %10, %0, %cst {dimension_numbers = #tpu.dot_dimension_numbers<[2], [1], [1], [2], [0, 0, 0, 1, 1, 2], [0], [0]>} : vector<4x15x16xf32>, vector<4x16x32xf32>, vector<4x15x32xf32> -> vector<4x15x32xf32>
    "tpu.trace_stop"() : () -> ()
    "tpu.trace_start"() <{level = 10 : i32, message = "gud,gsd->gus"}> : () -> ()
    %cst_11 = arith.constant dense<0.000000e+00> : vector<4x15x16xf32>
    %12 = tpu.matmul %11, %1, %cst_11 {dimension_numbers = #tpu.dot_dimension_numbers<[2], [2], [1], [1], [0, 0, 0, 1, 1, 1], [0], [0]>} : vector<4x15x32xf32>, vector<4x16x32xf32>, vector<4x15x16xf32> -> vector<4x15x16xf32>
    "tpu.trace_stop"() : () -> ()
    %cst_12 = arith.constant 0.176776692 : f32
    %13 = vector.broadcast %cst_12 : f32 to vector<4x15x16xf32>
    %14 = arith.mulf %12, %13 : vector<4x15x16xf32>
    %15 = tpu.iota {dimensions = array<i32: 2>} : vector<4x15x16xi32>
    %16 = vector.shape_cast %4 : vector<4x15xi32> to vector<4x15x1xi32>
    %17 = vector.broadcast %16 : vector<4x15x1xi32> to vector<4x15x16xi32>
    %18 = arith.cmpi sgt, %15, %17 : vector<4x15x16xi32>
    %cst_13 = arith.constant -1.000000e+30 : f32
    %19 = vector.broadcast %cst_13 : f32 to vector<4x15x16xf32>
    %20 = arith.select %18, %19, %14 : vector<4x15x16xi1>, vector<4x15x16xf32>
    %cst_14 = arith.constant dense<0xFF800000> : vector<4x15xf32>
    %21 = vector.multi_reduction <maximumf>, %20, %cst_14 [2] : vector<4x15x16xf32> to vector<4x15xf32>
    %22 = vector.shape_cast %21 : vector<4x15xf32> to vector<4x15x1xf32>
    %23 = vector.broadcast %22 : vector<4x15x1xf32> to vector<4x15x16xf32>
    %24 = arith.subf %20, %23 : vector<4x15x16xf32>
    %25 = math.exp %24 : vector<4x15x16xf32>
    %cst_15 = arith.constant dense<0.000000e+00> : vector<4x15xf32>
    %26 = vector.multi_reduction <add>, %25, %cst_15 [2] : vector<4x15x16xf32> to vector<4x15xf32>
    %27 = vector.shape_cast %26 : vector<4x15xf32> to vector<4x15x1xf32>
    %28 = tpu.reciprocal %27 {approx = true} : vector<4x15x1xf32> -> vector<4x15x1xf32>
    %29 = vector.broadcast %28 : vector<4x15x1xf32> to vector<4x15x16xf32>
    %30 = arith.mulf %25, %29 : vector<4x15x16xf32>
    "tpu.trace_start"() <{level = 10 : i32, message = "gus,gsd->gud"}> : () -> ()
    %cst_16 = arith.constant dense<0.000000e+00> : vector<4x15x32xf32>
    %31 = tpu.matmul %30, %2, %cst_16 {dimension_numbers = #tpu.dot_dimension_numbers<[2], [1], [1], [2], [0, 0, 0, 1, 1, 2], [0], [0]>} : vector<4x15x16xf32>, vector<4x16x32xf32>, vector<4x15x32xf32> -> vector<4x15x32xf32>
    "tpu.trace_stop"() : () -> ()
    %c0_17 = arith.constant 0 : index
    %c0_18 = arith.constant 0 : index
    %c0_19 = arith.constant 0 : index
    %32 = vector.load %arg4[%c0_17, %c0_18, %c0_19] : memref<4x16x32xf32, #tpu.memory_space<vmem>>, vector<4x16x32xf32>
    %33 = tpu.iota {dimensions = array<i32: 1>} : vector<4x16x15xi32>
    %34 = vector.shape_cast %4 : vector<4x15xi32> to vector<4x1x15xi32>
    %35 = vector.broadcast %34 : vector<4x1x15xi32> to vector<4x16x15xi32>
    %36 = arith.cmpi eq, %33, %35 : vector<4x16x15xi32>
    %37 = arith.extui %36 : vector<4x16x15xi1> to vector<4x16x15xi32>
    %38 = arith.sitofp %37 : vector<4x16x15xi32> to vector<4x16x15xf32>
    %cst_20 = arith.constant dense<0.000000e+00> : vector<4x16xf32>
    %39 = vector.multi_reduction <add>, %38, %cst_20 [2] : vector<4x16x15xf32> to vector<4x16xf32>
    %40 = vector.shape_cast %39 : vector<4x16xf32> to vector<4x16x1xf32>
    "tpu.trace_start"() <{level = 10 : i32, message = "glu,gud->gld"}> : () -> ()
    %cst_21 = arith.constant dense<0.000000e+00> : vector<4x16x32xf32>
    %41 = tpu.matmul %38, %31, %cst_21 {dimension_numbers = #tpu.dot_dimension_numbers<[2], [1], [1], [2], [0, 0, 0, 1, 1, 2], [0], [0]>} : vector<4x16x15xf32>, vector<4x15x32xf32>, vector<4x16x32xf32> -> vector<4x16x32xf32>
    %cst_22 = arith.constant 0.000000e+00 : f32
    "tpu.trace_stop"() : () -> ()
    %42 = vector.broadcast %cst_22 : f32 to vector<4x16x1xf32>
    %43 = arith.cmpf ogt, %40, %42 : vector<4x16x1xf32>
    %44 = vector.shape_cast %43 : vector<4x16x1xi1> to vector<4x16x1xi1>
    %45 = vector.broadcast %44 : vector<4x16x1xi1> to vector<4x16x32xi1>
    %46 = arith.select %45, %41, %32 : vector<4x16x32xi1>, vector<4x16x32xf32>
    %c0_23 = arith.constant 0 : index
    %c0_24 = arith.constant 0 : index
    %c0_25 = arith.constant 0 : index
    %47 = vector.load %arg6[%c0_23, %c0_24, %c0_25] : memref<4x16x32xf32, #tpu.memory_space<vmem>>, vector<4x16x32xf32>
    tpu.vector_store %arg6[%c0_23, %c0_24, %c0_25], %46 {strides = array<i32>} : memref<4x16x32xf32, #tpu.memory_space<vmem>>, vector<4x16x32xf32>,
    return
  }
  func.func @transform_0(%arg0: i32) -> (i32, i32, i32) {
    %c0_i32 = arith.constant 0 : i32
    %c0_i32_0 = arith.constant 0 : i32
    %c0_i32_1 = arith.constant 0 : i32
    return %arg0, %c0_i32, %c0_i32_0 : i32, i32, i32
  }
  func.func @transform_1(%arg0: i32) -> (i32, i32, i32) {
    %c0_i32 = arith.constant 0 : i32
    %c0_i32_0 = arith.constant 0 : i32
    %c0_i32_1 = arith.constant 0 : i32
    return %arg0, %c0_i32, %c0_i32_0 : i32, i32, i32
  }
  func.func @transform_2(%arg0: i32) -> (i32, i32, i32) {
    %c0_i32 = arith.constant 0 : i32
    %c0_i32_0 = arith.constant 0 : i32
    %c0_i32_1 = arith.constant 0 : i32
    return %arg0, %c0_i32, %c0_i32_0 : i32, i32, i32
  }
  func.func @transform_3(%arg0: i32) -> (i32, i32, i32) {
    %c0_i32 = arith.constant 0 : i32
    %c0_i32_0 = arith.constant 0 : i32
    %c0_i32_1 = arith.constant 0 : i32
    return %arg0, %c0_i32, %c0_i32_0 : i32, i32, i32
  }
  func.func @transform_4(%arg0: i32) -> (i32, i32, i32) {
    %c0_i32 = arith.constant 0 : i32
    %c0_i32_0 = arith.constant 0 : i32
    %c0_i32_1 = arith.constant 0 : i32
    return %arg0, %c0_i32, %c0_i32_0 : i32, i32, i32
  }
  func.func @transform_5(%arg0: i32) -> (i32, i32, i32) {
    %c0_i32 = arith.constant 0 : i32
    %c0_i32_0 = arith.constant 0 : i32
    %c0_i32_1 = arith.constant 0 : i32
    return %arg0, %c0_i32, %c0_i32_0 : i32, i32, i32
  }
}

</mosaic_0001>

<bundles_post_ra>
// kernel: prob_attention_forward.2
= control target key start
LH: loop header
LB: loop body
LE: loop exit
PB: predicated region body
PF: predicated region fallthrough
CT: control target
= control target key end

     0   :  { %s929_s12 = smov 0   ;;  %s931_s13 = smov 0   ;;  %s1060_s0 = inlined_call_operand.vmem [shape: f32[8,16,32], index: 0, kind: input, shape index: {}]   ;;  %s1061_s1 = inlined_call_operand.vmem [shape: f32[8,16,32], index: 1, kind: input, shape index: {}]   ;;  %s1062_s2 = inlined_call_operand.vmem [shape: f32[16,16], index: 2, kind: input, shape index: {}]   ;;  %s1063_s3 = inlined_call_operand.vmem [shape: f32[8,16,1], index: 3, kind: output, shape index: {}]  }
   0x1   :  { %s933_s14 = smov 0  }
   0x2 LB: > { %s25_s15 = sadd.s32 1, %s902_s13  ;;  %p784_p0 = scmp.ge.s32.totalorder %s906_s14, 1  ;;  %s906_s14 = sphi %s933_s14, %s13_s14   ;;  %s902_s13 = sphi %s931_s13, %s1065_s13   ;;  %s898_s12 = sphi %s929_s12, %s1064_s12  }
   0x3   : > { %p27_p1 = scmp.ge.s32.totalorder %s25_s15, 2  ;;  %p179_p2 = scmp.lt.s32.totalorder %s906_s14, 3 }
   0x5   : > { %s1067_s15 = smov (%p27_p1, %s25_s15), 0  ;;  %p180_p3 = pnand %p784_p0, %p179_p2 }
   0x6   : > { %s785_s16 = sshll.u32 (!%p180_p3), %s898_s12, 2 }
   0x7   : > { %183 = sbr.rel (%p180_p3) target bundleno = 375 (0x177), region = 32  ;;  %p220_p4 = scmp.lt.s32.totalorder (!%p180_p3), %s785_s16, 7 }
   0xc   : > { %s1069_s16 = smov (!%p220_p4, %s785_s16), 7  ;;  %vm280_vm0 = vcmask 261120   ;;  %vm253_vm1 = vcmask 7168   ;;  %v908_v16 = vmov -1e+30   ;;  %v279_v17 = vld [vmem:[%s1062_s2 + $0x8] sm:$0xff] }
   0xd   : > { %s947_s17 = sshll.u32 %s1069_s16, 4  ;;  %v278_v20 = vld [vmem:[%s1062_s2] sm:$0xff]  ;;  %vm637_vm2 = vcmask 130048  }
   0xe   : > { %s235_s20 = scalar_lea.vmem %s1061_s1, %s947_s17  ;;  %s957_s23 = scalar_lea.vmem %s1060_s0, %s947_s17 }
   0xf   : > { %v271_v0 = vld [vmem:[%s235_s20 + $0x8] sm:$0xff]  ;;  %v273_v1 = vld [vmem:[%s235_s20 + $0x18] sm:$0xff]  ;;  %v270_v2 = vld [vmem:[%s235_s20] sm:$0xff]  ;;  %s995_s26 = scalar_lea.vmem %s1063_s3, %s947_s17 }
  0x10   : > { %831 = vmatprep.subr.msk.mxu0 %vm280_vm0, %v271_v0  ;;  %838 = vmatprep.subr.msk.mxu1 %vm280_vm0, %v273_v1  ;;  %v272_v3 = vld [vmem:[%s235_s20 + $0x10] sm:$0xff]  ;;  %v262_v4 = vld [vmem:[%s957_s23] sm:$0xff]  ;;  %v275_v6 = vld [vmem:[%s235_s20 + $0x28] sm:$0xff]  ;;  %255 = vst.msk [vmem:[%s995_s26 + $0x8] sm:$0xff] %vm253_vm1, %v908_v16 }
  0x11   : > { %v264_v5 = vld [vmem:[%s957_s23 + $0x10] sm:$0xff]  ;;  %832 = vmatpush3.xpose.msk.msra.mxu0 %vm280_vm0, %v271_v0  ;;  %839 = vmatpush3.xpose.msk.msra.mxu1 %vm280_vm0, %v273_v1  ;;  %v277_v7 = vld [vmem:[%s235_s20 + $0x38] sm:$0xff]  ;;  %v263_v8 = vld [vmem:[%s957_s23 + $0x8] sm:$0xff]  ;;  %254 = vst.msk [vmem:[%s995_s26] sm:$0xff] %vm253_vm1, %v908_v16 }
  0x12   : > { %833 = vmatprep.subr.msk.mxu0 %vm280_vm0, %v270_v2  ;;  %840 = vmatprep.subr.msk.mxu1 %vm280_vm0, %v272_v3  ;;  %v265_v9 = vld [vmem:[%s957_s23 + $0x18] sm:$0xff]  ;;  %v274_v10 = vld [vmem:[%s235_s20 + $0x20] sm:$0xff]  ;;  %v276_v11 = vld [vmem:[%s235_s20 + $0x30] sm:$0xff]  ;;  %257 = vst.msk [vmem:[%s995_s26 + $0x18] sm:$0xff] %vm253_vm1, %v908_v16 }
  0x13   : > { %835 = vmatprep.mubr.msk.f32.mxu0 %vm280_vm0, %v262_v4  ;;  %842 = vmatprep.mubr.msk.f32.mxu1 %vm280_vm0, %v264_v5  ;;  %v266_v12 = vld [vmem:[%s957_s23 + $0x20] sm:$0xff]  ;;  %v268_v13 = vld [vmem:[%s957_s23 + $0x30] sm:$0xff]  ;;  %v267_v14 = vld [vmem:[%s957_s23 + $0x28] sm:$0xff]  ;;  %256 = vst.msk [vmem:[%s995_s26 + $0x10] sm:$0xff] %vm253_vm1, %v908_v16 }
  0x14   : > { %v269_v15 = vld [vmem:[%s957_s23 + $0x38] sm:$0xff]  ;;  %259 = vst.msk [vmem:[%s995_s26 + $0x28] sm:$0xff] %vm253_vm1, %v908_v16  ;;  %258 = vst.msk [vmem:[%s995_s26 + $0x20] sm:$0xff] %vm253_vm1, %v908_v16 }
  0x15   : > { %834 = vmatpush3.xpose.msk.msra.mxu0 %vm280_vm0, %v270_v2  ;;  %841 = vmatpush3.xpose.msk.msra.mxu1 %vm280_vm0, %v272_v3  ;;  %261 = vst.msk [vmem:[%s995_s26 + $0x38] sm:$0xff] %vm253_vm1, %v908_v16  ;;  %260 = vst.msk [vmem:[%s995_s26 + $0x30] sm:$0xff] %vm253_vm1, %v908_v16 }
  0x16   : > { %845 = vmatprep.subr.msk.mxu0 %vm280_vm0, %v275_v6  ;;  %852 = vmatprep.subr.msk.mxu1 %vm280_vm0, %v277_v7 }
  0x17   : > { %v630_v44 = vld [vmem:[%s995_s26 + $0x8] sm:$0xff] }
  0x18   : > { %836 = vmatmul.mubr.msk.f32.vlgmr.msra.gmra.mxu0 %vm280_vm0, %v263_v8  ;;  %843 = vmatmul.mubr.msk.f32.vlgmr.msra.gmra.mxu1 %vm280_vm0, %v265_v9  ;;  %v629_v52 = vld [vmem:[%s995_s26] sm:$0xff] }
  0x19   : > { %846 = vmatpush3.xpose.msk.msra.mxu0 %vm280_vm0, %v275_v6  ;;  %853 = vmatpush3.xpose.msk.msra.mxu1 %vm280_vm0, %v277_v7  ;;  %v632_v43 = vld [vmem:[%s995_s26 + $0x18] sm:$0xff] }
  0x1a   : > { %847 = vmatprep.subr.msk.mxu0 %vm280_vm0, %v274_v10  ;;  %854 = vmatprep.subr.msk.mxu1 %vm280_vm0, %v276_v11  ;;  %v631_v51 = vld [vmem:[%s995_s26 + $0x10] sm:$0xff] }
  0x1b   : > { %849 = vmatprep.mubr.msk.f32.mxu0 %vm280_vm0, %v266_v12  ;;  %856 = vmatprep.mubr.msk.f32.mxu1 %vm280_vm0, %v268_v13  ;;  %v634_v47 = vld [vmem:[%s995_s26 + $0x28] sm:$0xff]  ;;  %v633_v55 = vld [vmem:[%s995_s26 + $0x20] sm:$0xff] }
  0x1c   : > { %v636_v48 = vld [vmem:[%s995_s26 + $0x38] sm:$0xff]  ;;  %v635_v56 = vld [vmem:[%s995_s26 + $0x30] sm:$0xff] }
  0x1d   : > { %848 = vmatpush3.xpose.msk.msra.mxu0 %vm280_vm0, %v274_v10  ;;  %855 = vmatpush3.xpose.msk.msra.mxu1 %vm280_vm0, %v276_v11 }
  0x20   : > { %850 = vmatmul.mubr.msk.f32.vlgmr.msra.gmra.mxu0 %vm280_vm0, %v267_v14  ;;  %857 = vmatmul.mubr.msk.f32.vlgmr.msra.gmra.mxu1 %vm280_vm0, %v269_v15 }
  0xd8   : > { %v837_v18 = vpop.f32.mrf.mxu0  ;;  %v844_v19 = vpop.f32.mrf.mxu1 }
  0xd9   : > { %v365_v21 = vadd.f32 %v837_v18, %v279_v17  ;;  %v452_v22 = vadd.f32 %v844_v19, %v279_v17 }
  0xda   : > { %v359_v23 = vpop.f32.mrf.mxu0  ;;  %v446_v24 = vpop.f32.mrf.mxu1 }
  0xdb   : > { %v360_v25 = vadd.f32 %v359_v23, %v278_v20  ;;  %v447_v26 = vadd.f32 %v446_v24, %v278_v20  ;;  %v647_v27 = vsel %vm637_vm2, %v452_v22, -inf  ;;  %v641_v28 = vsel %vm637_vm2, %v365_v21, -inf }
  0xdc   : > { %648 = vmax.xlane.f32.xlu1 %v647_v27  ;;  %642 = vmax.xlane.f32.xlu0 %v641_v28 }
  0xdd   : > { %v644_v29 = vsel %vm637_vm2, %v447_v26, -inf  ;;  %v638_v30 = vsel %vm637_vm2, %v360_v25, -inf }
  0xe0   : > { %645 = vmax.xlane.f32.xlu1 %v644_v29  ;;  %v851_v31 = vpop.f32.mrf.mxu0  ;;  %639 = vmax.xlane.f32.xlu0 %v638_v30  ;;  %v858_v32 = vpop.f32.mrf.mxu1 }
  0xe1   : > { %v539_v33 = vadd.f32 %v851_v31, %v279_v17  ;;  %v626_v34 = vadd.f32 %v858_v32, %v279_v17 }
  0xe2   : > { %v533_v35 = vpop.f32.mrf.mxu0  ;;  %v620_v36 = vpop.f32.mrf.mxu1 }
  0xe3   : > { %v534_v37 = vadd.f32 %v533_v35, %v278_v20  ;;  %v653_v38 = vsel %vm637_vm2, %v539_v33, -inf  ;;  %v621_v39 = vadd.f32 %v620_v36, %v278_v20  ;;  %v659_v41 = vsel %vm637_vm2, %v626_v34, -inf }
  0xe4   : > { %654 = vmax.xlane.f32.xlu1 %v653_v38 }
  0xe5   : > { %v650_v40 = vsel %vm637_vm2, %v534_v37, -inf  ;;  %v656_v42 = vsel %vm637_vm2, %v621_v39, -inf }
  0xe6   : > { %651 = vmax.xlane.f32.xlu0 %v650_v40 }
  0xe8   : > { %660 = vmax.xlane.f32.xlu1 %v659_v41 }
  0xea   : > { %657 = vmax.xlane.f32.xlu0 %v656_v42 }
 0x165   : > { %v649_v45 = vpop.xlane.xlu1 %648  ;;  %v643_v46 = vpop.xlane.xlu0 %642 }
 0x166   : > { %v665_v49 = vmax.f32 %v632_v43, %v649_v45  ;;  %v663_v50 = vmax.f32 %v630_v44, %v643_v46 }
 0x168   : > { %672 = vst.msk [vmem:[%s995_s26 + $0x8] sm:$0xff] %vm253_vm1, %v663_v50  ;;  %674 = vst.msk [vmem:[%s995_s26 + $0x18] sm:$0xff] %vm253_vm1, %v665_v49 }
 0x169   : > { %v646_v53 = vpop.xlane.xlu1 %645  ;;  %v640_v54 = vpop.xlane.xlu0 %639 }
 0x16a   : > { %v664_v57 = vmax.f32 %v631_v51, %v646_v53  ;;  %v662_v58 = vmax.f32 %v629_v52, %v640_v54 }
 0x16c   : > { %671 = vst.msk [vmem:[%s995_s26] sm:$0xff] %vm253_vm1, %v662_v58  ;;  %673 = vst.msk [vmem:[%s995_s26 + $0x10] sm:$0xff] %vm253_vm1, %v664_v57 }
 0x16d   : > { %v655_v59 = vpop.xlane.xlu1 %654 }
 0x16e   : > { %v667_v60 = vmax.f32 %v634_v47, %v655_v59 }
 0x16f   : > { %v652_v61 = vpop.xlane.xlu0 %651 }
 0x170   : > { %v666_v62 = vmax.f32 %v633_v55, %v652_v61  ;;  %676 = vst.msk [vmem:[%s995_s26 + $0x28] sm:$0xff] %vm253_vm1, %v667_v60 }
 0x171   : > { %v661_v63 = vpop.xlane.xlu1 %660 }
 0x172   : > { %v669_v0 = vmax.f32 %v636_v48, %v661_v63  ;;  %675 = vst.msk [vmem:[%s995_s26 + $0x20] sm:$0xff] %vm253_vm1, %v666_v62 }
 0x173   : > { %v658_v1 = vpop.xlane.xlu0 %657 }
 0x174   : > { %678 = vst.msk [vmem:[%s995_s26 + $0x38] sm:$0xff] %vm253_vm1, %v669_v0  ;;  %v668_v2 = vmax.f32 %v635_v56, %v658_v1 }
 0x176   : > { %677 = vst.msk [vmem:[%s995_s26 + $0x30] sm:$0xff] %vm253_vm1, %v668_v2 }
 0x177 PF: > { %s13_s14 = sadd.s32 1, %s906_s14   ;;  %s1064_s12 = smov %s902_s13 }
 0x178   : > { %p10_p5 = scmp.ge.s32.totalorder %s13_s14, 4   ;;  %s1065_s13 = smov %s1067_s15 }
 0x17a   :  { %12 = sbr.rel (!%p10_p5) target bundleno = 2 (0x2), region = 72 }

// kernel: prob_attention_forward.3
= control target key start
LH: loop header
LB: loop body
LE: loop exit
PB: predicated region body
PF: predicated region fallthrough
CT: control target
= control target key end

     0   :  { %s2424_s18 = smov 0   ;;  %s2732_s0 = inlined_call_operand.vmem [shape: f32[8,16,32], index: 0, kind: input, shape index: {}]   ;;  %s2733_s1 = inlined_call_operand.vmem [shape: f32[8,16,32], index: 1, kind: input, shape index: {}]   ;;  %s2734_s2 = inlined_call_operand.vmem [shape: f32[8,16,32], index: 2, kind: input, shape index: {}]   ;;  %s2735_s3 = inlined_call_operand.vmem [shape: f32[8,16,32], index: 3, kind: input, shape index: {}]   ;;  %s2736_s4 = inlined_call_operand.vmem [shape: s32[8,1,15], index: 4, kind: input, shape index: {}]   ;;  %s2737_s5 = inlined_call_operand.vmem [shape: f32[8,16,32], index: 5, kind: output, shape index: {}]  }
   0x1 LB: > { %s2076_s19 = sadd.s32 4294967295, %s2391_s18   ;;  %p2080_p0 = scmp.ge.s32.totalorder %s2391_s18, 1  ;;  %s2391_s18 = sphi %s2424_s18, %s15_s18  }
   0x2   : > { %p235_p1 = scmp.lt.s32.totalorder %s2391_s18, 3 }
   0x4   : > { %p236_p2 = pnand %p2080_p0, %p235_p1 }
   0x5   : > { %s2081_s20 = sshll.u32 (!%p236_p2), %s2076_s19, 2 }
   0x6   : > { %239 = sbr.rel (%p236_p2) target bundleno = 1251 (0x4e3), region = 40  ;;  %p288_p3 = scmp.lt.s32.totalorder (!%p236_p2), %s2081_s20, 7 }
   0xb   : > { %s2739_s20 = smov (!%p288_p3, %s2081_s20), 7  ;;  %v355_v10 = vlaneseq  ;;  %vm425_vm0 = vcmask 130048   ;;  %v2393_v14 = vmov 0.0   ;;  %vm750_vm9 = vcmask 261120  }
   0xc   : > { %s318_s23 = scalar_lea.vmem %s2736_s4, %s2739_s20  ;;  %s2435_s24 = sshll.u32 %s2739_s20, 4 }
   0xd   : > { %v2437_v0 = vld [vmem:[%s318_s23 + $0x1] ss:$0 sm:$0xff]  ;;  %v2439_v1 = vld [vmem:[%s318_s23] ss:$0 sm:$0xff]  ;;  %s2447_s27 = scalar_lea.vmem %s2732_s0, %s2435_s24  ;;  %v2457_v8 = vld [vmem:[%s318_s23 + $0x2] ss:$0 sm:$0xff]  ;;  %s2500_s30 = scalar_lea.vmem %s2733_s1, %s2435_s24 }
   0xe   : > { %373 = vbcast.lane.b32.xlu1 %v2437_v0, 256  ;;  %362 = vbcast.lane.b32.xlu0 %v2439_v1, 256  ;;  %v328_v2 = vld [vmem:[%s2447_s27 + $0x8] sm:$0xff]  ;;  %v330_v3 = vld [vmem:[%s2447_s27 + $0x18] sm:$0xff]  ;;  %v327_v4 = vld [vmem:[%s2447_s27] sm:$0xff]  ;;  %v2466_v11 = vand.u32 127, %v355_v10  ;;  %s2628_s8 = scalar_lea.vmem %s2734_s2, %s2435_s24  ;;  %s2697_s11 = scalar_lea.vmem %s2735_s3, %s2435_s24 }
   0xf   : > { %2232 = vmatprep.subr.mxu0 %v328_v2  ;;  %2239 = vmatprep.subr.mxu1 %v330_v3  ;;  %v329_v5 = vld [vmem:[%s2447_s27 + $0x10] sm:$0xff]  ;;  %v332_v6 = vld [vmem:[%s2447_s27 + $0x28] sm:$0xff]  ;;  %v334_v7 = vld [vmem:[%s2447_s27 + $0x38] sm:$0xff]  ;;  %s2704_s14 = scalar_lea.vmem %s2737_s5, %s2435_s24 }
  0x10   : > { %2233 = vmatpush3.msra.mxu0 %v328_v2  ;;  %2240 = vmatpush3.msra.mxu1 %v330_v3  ;;  %v2461_v9 = vld [vmem:[%s318_s23 + $0x3] ss:$0 sm:$0xff]  ;;  %v333_v22 = vld [vmem:[%s2447_s27 + $0x30] sm:$0xff]  ;;  %v336_v25 = vld [vmem:[%s2500_s30 + $0x8] sm:$0xff] }
  0x11   : > { %2234 = vmatprep.subr.mxu0 %v327_v4  ;;  %2241 = vmatprep.subr.mxu1 %v329_v5  ;;  %v331_v21 = vld [vmem:[%s2447_s27 + $0x20] sm:$0xff]  ;;  %v338_v28 = vld [vmem:[%s2500_s30 + $0x18] sm:$0xff]  ;;  %v337_v34 = vld [vmem:[%s2500_s30 + $0x10] sm:$0xff] }
  0x12   : > { %377 = vbcast.lane.b32.xlu1 %v2437_v0, 264  ;;  %366 = vbcast.lane.b32.xlu0 %v2439_v1, 264  ;;  %v335_v29 = vld [vmem:[%s2500_s30] sm:$0xff]  ;;  %v340_v35 = vld [vmem:[%s2500_s30 + $0x28] sm:$0xff]  ;;  %v342_v36 = vld [vmem:[%s2500_s30 + $0x38] sm:$0xff] }
  0x13   : > { %2235 = vmatpush3.msra.mxu0 %v327_v4  ;;  %2242 = vmatpush3.msra.mxu1 %v329_v5  ;;  %v339_v41 = vld [vmem:[%s2500_s30 + $0x20] sm:$0xff]  ;;  %v341_v42 = vld [vmem:[%s2500_s30 + $0x30] sm:$0xff] }
  0x14   : > { %2246 = vmatprep.subr.mxu0 %v332_v6  ;;  %2253 = vmatprep.subr.mxu1 %v334_v7 }
  0x16   : > { %384 = vbcast.lane.b32.xlu0 %v2457_v8, 256  ;;  %388 = vbcast.lane.b32.xlu1 %v2457_v8, 264 }
  0x1a   : > { %395 = vbcast.lane.b32.xlu0 %v2461_v9, 256  ;;  %399 = vbcast.lane.b32.xlu1 %v2461_v9, 264 }
  0x80   : > { %v2468_v12 = vpop.permute.xlu1 %373  ;;  %v2470_v13 = vpop.permute.xlu0 %362 }
  0x81   : > { %vm1109_vm1 = vcmp.gt.s32.totalorder %v2466_v11, %v2468_v12  ;;  %vm1107_vm2 = vcmp.gt.s32.totalorder %v2466_v11, %v2470_v13  ;;  %vm403_vm3 = vcmp.eq.s32.totalorder %v2466_v11, %v2468_v12  ;;  %vm401_vm4 = vcmp.eq.s32.totalorder %v2466_v11, %v2470_v13 }
  0x82   : > { %v2103_v15 = vsel %vm403_vm3, 1.0, %v2393_v14  ;;  %v2101_v16 = vsel %vm401_vm4, 1.0, %v2393_v14  ;;  %vm1126_vm3 = vcmask 129024  }
  0x83   : > { %2243 = vmatprep.mubr.msk.f32.mxu1 %vm425_vm0, %v2103_v15  ;;  %2236 = vmatprep.mubr.msk.f32.mxu0 %vm425_vm0, %v2101_v16 }
  0x84   : > { %v2484_v17 = vpop.permute.xlu1 %377  ;;  %v2486_v18 = vpop.permute.xlu0 %366 }
  0x85   : > { %vm404_vm5 = vcmp.eq.s32.totalorder %v2466_v11, %v2484_v17  ;;  %vm1110_vm6 = vcmp.gt.s32.totalorder %v2466_v11, %v2484_v17  ;;  %vm402_vm7 = vcmp.eq.s32.totalorder %v2466_v11, %v2486_v18  ;;  %vm1108_vm8 = vcmp.gt.s32.totalorder %v2466_v11, %v2486_v18 }
  0x86   : > { %v2104_v19 = vsel %vm404_vm5, 1.0, %v2393_v14  ;;  %v2102_v20 = vsel %vm402_vm7, 1.0, %v2393_v14  ;;  %vm1571_vm5 = vcmask 121856  }
  0x87   : > { %2237 = vmatmul.mubr.msk.f32.vlgmr.msra.gmra.mxu0 %vm425_vm0, %v2102_v20  ;;  %2244 = vmatmul.mubr.msk.f32.vlgmr.msra.gmra.mxu1 %vm425_vm0, %v2104_v19 }
  0x88   : > { %v2508_v23 = vpop.permute.xlu0 %384  ;;  %v2510_v24 = vpop.permute.xlu1 %388  ;;  %2247 = vmatpush3.msra.mxu0 %v332_v6  ;;  %2254 = vmatpush3.msra.mxu1 %v334_v7 }
  0x89   : > { %vm405_vm10 = vcmp.eq.s32.totalorder %v2466_v11, %v2508_v23  ;;  %vm1111_vm11 = vcmp.gt.s32.totalorder %v2466_v11, %v2508_v23  ;;  %vm406_vm12 = vcmp.eq.s32.totalorder %v2466_v11, %v2510_v24  ;;  %vm1112_vm13 = vcmp.gt.s32.totalorder %v2466_v11, %v2510_v24  ;;  %2248 = vmatprep.subr.mxu0 %v331_v21 }
  0x8a   : > { %v2105_v26 = vsel %vm405_vm10, 1.0, %v2393_v14  ;;  %v2106_v27 = vsel %vm406_vm12, 1.0, %v2393_v14  ;;  %2249 = vmatpush3.msra.mxu0 %v331_v21  ;;  %2255 = vmatprep.subr.mxu1 %v333_v22 }
  0x8b   : > { %2250 = vmatprep.mubr.msk.f32.mxu0 %vm425_vm0, %v2105_v26  ;;  %2256 = vmatpush3.msra.mxu1 %v333_v22 }
  0x8c   : > { %v2526_v30 = vpop.permute.xlu0 %395  ;;  %v2528_v31 = vpop.permute.xlu1 %399  ;;  %2251 = vmatmul.mubr.msk.f32.vlgmr.msra.gmra.mxu0 %vm425_vm0, %v2106_v27  ;;  %2260 = vmatprep.subr.msk.mxu0 %vm750_vm9, %v336_v25 }
  0x8d   : > { %vm407_vm14 = vcmp.eq.s32.totalorder %v2466_v11, %v2526_v30  ;;  %vm408_vm15 = vcmp.eq.s32.totalorder %v2466_v11, %v2528_v31  ;;  %2261 = vmatpush3.xpose.msk.msra.mxu0 %vm750_vm9, %v336_v25  ;;  %2267 = vmatprep.subr.msk.mxu1 %vm750_vm9, %v338_v28 }
  0x8e   : > { %v2107_v32 = vsel %vm407_vm14, 1.0, %v2393_v14  ;;  %v2108_v33 = vsel %vm408_vm15, 1.0, %v2393_v14  ;;  %2262 = vmatprep.subr.msk.mxu0 %vm750_vm9, %v335_v29 }
  0x8f   : > { %2257 = vmatprep.mubr.msk.f32.mxu1 %vm425_vm0, %v2107_v32 }
  0x90   : > { %2258 = vmatmul.mubr.msk.f32.vlgmr.msra.gmra.mxu1 %vm425_vm0, %v2108_v33 }
  0x91   : > { %2268 = vmatpush3.xpose.msk.msra.mxu1 %vm750_vm9, %v338_v28  ;;  %2263 = vmatpush3.xpose.msk.msra.mxu0 %vm750_vm9, %v335_v29 }
  0x92   : > { %2269 = vmatprep.subr.msk.mxu1 %vm750_vm9, %v337_v34  ;;  %2274 = vmatprep.subr.msk.mxu0 %vm750_vm9, %v340_v35 }
  0x95   : > { %2270 = vmatpush3.xpose.msk.msra.mxu1 %vm750_vm9, %v337_v34 }
  0x96   : > { %2281 = vmatprep.subr.msk.mxu1 %vm750_vm9, %v342_v36 }
 0x147   : > { %v2238_v37 = vpop.f32.mrf.mxu0  ;;  %v2245_v38 = vpop.f32.mrf.mxu1 }
 0x149   : > { %v498_v39 = vpop.f32.mrf.mxu0  ;;  %v579_v40 = vpop.f32.mrf.mxu1 }
 0x14a   : > { %2264 = vmatprep.mubr.msk.f32.mxu0 %vm750_vm9, %v498_v39  ;;  %2271 = vmatprep.mubr.msk.f32.mxu1 %vm750_vm9, %v579_v40 }
 0x14b   : > { %2265 = vmatmul.mubr.msk.f32.vlgmr.msra.gmra.mxu0 %vm750_vm9, %v2238_v37  ;;  %2272 = vmatmul.mubr.msk.f32.vlgmr.msra.gmra.mxu1 %vm750_vm9, %v2245_v38 }
 0x14c   : > { %2275 = vmatpush3.xpose.msk.msra.mxu0 %vm750_vm9, %v340_v35  ;;  %2282 = vmatpush3.xpose.msk.msra.mxu1 %vm750_vm9, %v342_v36  ;;  %v2252_v43 = vpop.f32.mrf.mxu0 }
 0x14d   : > { %2276 = vmatprep.subr.msk.mxu0 %vm750_vm9, %v339_v41  ;;  %2283 = vmatprep.subr.msk.mxu1 %vm750_vm9, %v341_v42 }
 0x14e   : > { %v660_v44 = vpop.f32.mrf.mxu0 }
 0x14f   : > { %2278 = vmatprep.mubr.msk.f32.mxu0 %vm750_vm9, %v660_v44 }
 0x150   : > { %2277 = vmatpush3.xpose.msk.msra.mxu0 %vm750_vm9, %v339_v41  ;;  %v2259_v45 = vpop.f32.mrf.mxu1  ;;  %2284 = vmatpush3.xpose.msk.msra.mxu1 %vm750_vm9, %v341_v42 }
 0x152   : > { %v741_v46 = vpop.f32.mrf.mxu1 }
 0x153   : > { %2279 = vmatmul.mubr.msk.f32.vlgmr.msra.gmra.mxu0 %vm750_vm9, %v2252_v43  ;;  %2285 = vmatprep.mubr.msk.f32.mxu1 %vm750_vm9, %v741_v46 }
 0x154   : > { %2286 = vmatmul.mubr.msk.f32.vlgmr.msra.gmra.mxu1 %vm750_vm9, %v2259_v45 }
 0x20b   : > { %v2266_v47 = vpop.f32.mrf.mxu0  ;;  %v2273_v48 = vpop.f32.mrf.mxu1 }
 0x20c   : > { %v1100_v49 = vmul.f32 0.17677669, %v2266_v47  ;;  %v1102_v50 = vmul.f32 0.17677669, %v2273_v48 }
 0x20d   : > { %v829_v51 = vpop.f32.mrf.mxu0  ;;  %v916_v52 = vpop.f32.mrf.mxu1 }
 0x20e   : > { %v1099_v53 = vmul.f32 0.17677669, %v829_v51  ;;  %v1118_v54 = vsel %vm1110_vm6, -1e+30, %v1102_v50  ;;  %v1116_v56 = vsel %vm1108_vm8, -1e+30, %v1100_v49 }
 0x20f   : > { %v1133_v55 = vsel %vm1126_vm3, %v1118_v54, -inf  ;;  %v1101_v57 = vmul.f32 0.17677669, %v916_v52  ;;  %v1127_v58 = vsel %vm1126_vm3, %v1116_v56, -inf }
 0x210   : > { %1134 = vmax.xlane.f32.xlu0 %v1133_v55  ;;  %v1115_v59 = vsel %vm1107_vm2, -1e+30, %v1099_v53  ;;  %1128 = vmax.xlane.f32.xlu1 %v1127_v58  ;;  %vm1113_vm2 = vcmp.gt.s32.totalorder %v2466_v11, %v2526_v30 }
 0x211   : > { %v1123_v61 = vsel %vm425_vm0, %v1115_v59, -inf  ;;  %v1117_v2 = vsel %vm1109_vm1, -1e+30, %v1101_v57  ;;  %vm1114_vm1 = vcmp.gt.s32.totalorder %v2466_v11, %v2528_v31 }
 0x212   : > { %v1130_v7 = vsel %vm425_vm0, %v1117_v2, -inf }
 0x213   : > { %v2280_v60 = vpop.f32.mrf.mxu0 }
 0x214   : > { %v1104_v62 = vmul.f32 0.17677669, %v2280_v60  ;;  %v2287_v63 = vpop.f32.mrf.mxu1  ;;  %1124 = vmax.xlane.f32.xlu0 %v1123_v61  ;;  %v344_v61 = vld [vmem:[%s2628_s8 + $0x8] sm:$0xff] }
 0x215   : > { %v1003_v3 = vpop.f32.mrf.mxu0  ;;  %v1106_v15 = vmul.f32 0.17677669, %v2287_v63  ;;  %2288 = vmatprep.subr.mxu0 %v344_v61  ;;  %v346_v63 = vld [vmem:[%s2628_s8 + $0x18] sm:$0xff] }
 0x216   : > { %v1103_v4 = vmul.f32 0.17677669, %v1003_v3  ;;  %v1090_v5 = vpop.f32.mrf.mxu1  ;;  %v1120_v16 = vsel %vm1112_vm13, -1e+30, %v1104_v62  ;;  %v343_v62 = vld [vmem:[%s2628_s8] sm:$0xff]  ;;  %2289 = vmatpush3.msra.mxu0 %v344_v61  ;;  %2295 = vmatprep.subr.mxu1 %v346_v63  ;;  %v348_v3 = vld [vmem:[%s2628_s8 + $0x28] sm:$0xff] }
 0x217   : > { %v1105_v6 = vmul.f32 0.17677669, %v1090_v5  ;;  %v1139_v18 = vsel %vm1126_vm3, %v1120_v16, -inf  ;;  %v1122_v19 = vsel %vm1114_vm1, -1e+30, %v1106_v15  ;;  %2290 = vmatprep.subr.mxu0 %v343_v62  ;;  %2296 = vmatpush3.msra.mxu1 %v346_v63  ;;  %vm1602_vm13 = vcmask 1046528  }
 0x218   : > { %1131 = vmax.xlane.f32.xlu0 %v1130_v7  ;;  %v1119_v13 = vsel %vm1111_vm11, -1e+30, %v1103_v4  ;;  %v1145_v21 = vsel %vm1126_vm3, %v1122_v19, -inf  ;;  %2291 = vmatpush3.msra.mxu0 %v343_v62  ;;  %v350_v4 = vld [vmem:[%s2628_s8 + $0x38] sm:$0xff]  ;;  %v1536_v61 = vld [vmem:[%s2697_s11] sm:$0xff] }
 0x219   : > { %v1136_v12 = vsel %vm425_vm0, %v1119_v13, -inf  ;;  %v1121_v17 = vsel %vm1113_vm2, -1e+30, %v1105_v6  ;;  %2302 = vmatprep.subr.mxu0 %v348_v3 }
 0x21a   : > { %1137 = vmax.xlane.f32.xlu1 %v1136_v12  ;;  %v1142_v20 = vsel %vm425_vm0, %v1121_v17, -inf }
 0x21c   : > { %1140 = vmax.xlane.f32.xlu0 %v1139_v18 }
 0x21e   : > { %1143 = vmax.xlane.f32.xlu1 %v1142_v20 }
 0x220   : > { %1146 = vmax.xlane.f32.xlu0 %v1145_v21 }
 0x299   : > { %v1135_v22 = vpop.xlane.xlu0 %1134  ;;  %v1129_v24 = vpop.xlane.xlu1 %1128 }
 0x29a   : > { %v1151_v23 = vsub.f32 %v1118_v54, %v1135_v22  ;;  %v1149_v25 = vsub.f32 %v1116_v56, %v1129_v24 }
 0x29c   : > { %v1162_v26 = vmul.f32 1.442695, %v1151_v23  ;;  %v1158_v27 = vmul.f32 1.442695, %v1149_v25  ;;  %v347_v23 = vld [vmem:[%s2628_s8 + $0x20] sm:$0xff] }
 0x29d   : > { %v1125_v28 = vpop.xlane.xlu0 %1124 }
 0x29e   : > { %v1148_v29 = vsub.f32 %v1115_v59, %v1125_v28  ;;  %2353 = vpow2.f32 %v1158_v27  ;;  %v349_v27 = vld [vmem:[%s2628_s8 + $0x30] sm:$0xff] }
 0x29f   : > { %2355 = vpow2.f32 %v1162_v26 }
 0x2a0   : > { %v1156_v11 = vmul.f32 1.442695, %v1148_v29 }
 0x2a1   : > { %v1132_v30 = vpop.xlane.xlu0 %1131 }
 0x2a2   : > { %2357 = vpow2.f32 %v1156_v11  ;;  %v1150_v31 = vsub.f32 %v1117_v2, %v1132_v30  ;;  %v345_v2 = vld [vmem:[%s2628_s8 + $0x10] sm:$0xff] }
 0x2a3   : > { %v1138_v32 = vpop.xlane.xlu1 %1137  ;;  %2297 = vmatprep.subr.mxu1 %v345_v2 }
 0x2a4   : > { %v1160_v33 = vmul.f32 1.442695, %v1150_v31  ;;  %v1152_v34 = vsub.f32 %v1119_v13, %v1138_v32  ;;  %2298 = vmatpush3.msra.mxu1 %v345_v2  ;;  %v1539_v2 = vld [vmem:[%s2697_s11 + $0x18] sm:$0xff] }
 0x2a5   : > { %v1141_v35 = vpop.xlane.xlu0 %1140  ;;  %2309 = vmatprep.subr.mxu1 %v350_v4 }
 0x2a6   : > { %2359 = vpow2.f32 %v1160_v33  ;;  %v1164_v36 = vmul.f32 1.442695, %v1152_v34  ;;  %v1153_v37 = vsub.f32 %v1120_v16, %v1141_v35  ;;  %v1545_v35 = vshrl.u32 %v355_v10, 7 }
 0x2a7   : > { %v1144_v38 = vpop.xlane.xlu1 %1143 }
 0x2a8   : > { %2361 = vpow2.f32 %v1164_v36  ;;  %v1166_v39 = vmul.f32 1.442695, %v1153_v37  ;;  %v1154_v40 = vsub.f32 %v1121_v17, %v1144_v38  ;;  %vm1547_vm4 = vcmp.eq.s32.totalorder %v1545_v35, %v2439_v1 }
 0x2a9   : > { %v1147_v41 = vpop.xlane.xlu0 %1146  ;;  %v2141_v36 = vsel %vm1547_vm4, 1.0, %v2393_v14  ;;  %vm1549_vm6 = vcmp.eq.s32.totalorder %v1545_v35, %v2437_v0  ;;  %v1546_v38 = vadd.s32 8, %v1545_v35  ;;  %vm1551_vm8 = vcmp.eq.s32.totalorder %v1545_v35, %v2457_v8 }
 0x2aa   : > { %2363 = vpow2.f32 %v1166_v39  ;;  %v1168_v42 = vmul.f32 1.442695, %v1154_v40  ;;  %v1155_v43 = vsub.f32 %v1122_v19, %v1147_v41  ;;  %v2143_v37 = vsel %vm1549_vm6, 1.0, %v2393_v14 }
 0x2ab   : > { %v2598_v44 = vpop.eup %2353  ;;  %vm1548_vm7 = vcmp.eq.s32.totalorder %v1546_v38, %v2439_v1  ;;  %v1572_v40 = vsel %vm1571_vm5, %v2141_v36, 0.0  ;;  %vm1552_vm10 = vcmp.eq.s32.totalorder %v1546_v38, %v2457_v8  ;;  %v1578_v1 = vsel %vm1571_vm5, %v2143_v37, 0.0 }
 0x2ac   : > { %2365 = vpow2.f32 %v1168_v42  ;;  %v1170_v45 = vmul.f32 1.442695, %v1155_v43  ;;  %v1175_v46 = vsel %vm1126_vm3, %v2598_v44, 0.0  ;;  %v2602_v47 = vpop.eup %2355  ;;  %v2142_v10 = vsel %vm1548_vm7, 1.0, %v2393_v14 }
 0x2ad   : > { %1176 = vadd.xlane.f32.xlu0 %v1175_v46  ;;  %v1181_v50 = vsel %vm1126_vm3, %v2602_v47, 0.0  ;;  %v1575_v39 = vsel %vm1571_vm5, %v2142_v10, 0.0  ;;  %v2146_v43 = vsel %vm1552_vm10, 1.0, %v2393_v14  ;;  %vm1553_vm11 = vcmp.eq.s32.totalorder %v1545_v35, %v2461_v9 }
 0x2ae   : > { %2367 = vpow2.f32 %v1170_v45  ;;  %vm1554_vm12 = vcmp.eq.s32.totalorder %v1546_v38, %v2461_v9  ;;  %v2147_v8 = vsel %vm1553_vm11, 1.0, %v2393_v14 }
 0x2af   : > { %v2358_v48 = vpop.eup %2357  ;;  %v2148_v46 = vsel %vm1554_vm12, 1.0, %v2393_v14 }
 0x2b0   : > { %v1172_v49 = vsel %vm425_vm0, %v2358_v48, 0.0 }
 0x2b1   : > { %1173 = vadd.xlane.f32.xlu1 %v1172_v49  ;;  %1182 = vadd.xlane.f32.xlu0 %v1181_v50 }
 0x2b3   : > { %v2360_v51 = vpop.eup %2359 }
 0x2b4   : > { %v1178_v52 = vsel %vm425_vm0, %v2360_v51, 0.0 }
 0x2b5   : > { %v2608_v53 = vpop.eup %2361  ;;  %1179 = vadd.xlane.f32.xlu1 %v1178_v52 }
 0x2b6   : > { %v1184_v56 = vsel %vm425_vm0, %v2608_v53, 0.0 }
 0x2b7   : > { %v2610_v54 = vpop.eup %2363 }
 0x2b8   : > { %v1187_v55 = vsel %vm1126_vm3, %v2610_v54, 0.0 }
 0x2b9   : > { %v2616_v57 = vpop.eup %2365  ;;  %1188 = vadd.xlane.f32.xlu0 %v1187_v55  ;;  %1185 = vadd.xlane.f32.xlu1 %v1184_v56 }
 0x2ba   : > { %v1190_v60 = vsel %vm425_vm0, %v2616_v57, 0.0 }
 0x2bb   : > { %v2618_v58 = vpop.eup %2367 }
 0x2bc   : > { %v1193_v59 = vsel %vm1126_vm3, %v2618_v58, 0.0 }
 0x2bd   : > { %1194 = vadd.xlane.f32.xlu0 %v1193_v59  ;;  %1191 = vadd.xlane.f32.xlu1 %v1190_v60 }
 0x2c1   : > { %1576 = vadd.xlane.f32.xlu0 %v1575_v39  ;;  %1573 = vadd.xlane.f32.xlu1 %v1572_v40 }
 0x2c5   : > { %1579 = vadd.xlane.f32.xlu1 %v1578_v1 }
 0x336   : > { %v1177_v5 = vpop.xlane.xlu0 %1176 }
 0x337   : > { %2369 = vrcp.f32 %v1177_v5 }
 0x33a   : > { %v1174_v6 = vpop.xlane.xlu1 %1173  ;;  %v1183_v7 = vpop.xlane.xlu0 %1182 }
 0x33b   : > { %2371 = vrcp.f32 %v1174_v6  ;;  %v1538_v6 = vld [vmem:[%s2697_s11 + $0x10] sm:$0xff] }
 0x33c   : > { %2373 = vrcp.f32 %v1183_v7 }
 0x33e   : > { %v1180_v15 = vpop.xlane.xlu1 %1179 }
 0x33f   : > { %2375 = vrcp.f32 %v1180_v15 }
 0x342   : > { %v1189_v13 = vpop.xlane.xlu0 %1188  ;;  %v1186_v16 = vpop.xlane.xlu1 %1185 }
 0x343   : > { %2377 = vrcp.f32 %v1189_v13 }
 0x344   : > { %2379 = vrcp.f32 %v1186_v16  ;;  %v2370_v18 = vpop.eup %2369 }
 0x345   : > { %v1205_v21 = vmul.f32 %v2370_v18, %v2598_v44  ;;  %v1587_v44 = vsel %vm1571_vm5, %v2146_v43, 0.0 }
 0x346   : > { %v1195_v12 = vpop.xlane.xlu0 %1194  ;;  %v1192_v17 = vpop.xlane.xlu1 %1191 }
 0x347   : > { %2381 = vrcp.f32 %v1195_v12  ;;  %v1541_v12 = vld [vmem:[%s2697_s11 + $0x28] sm:$0xff] }
 0x348   : > { %v2372_v19 = vpop.eup %2371  ;;  %2383 = vrcp.f32 %v1192_v17 }
 0x349   : > { %v1204_v20 = vmul.f32 %v2372_v19, %v2358_v48  ;;  %v2374_v22 = vpop.eup %2373  ;;  %v1590_v48 = vsel %vm1571_vm5, %v2147_v8, 0.0  ;;  %v1540_v19 = vld [vmem:[%s2697_s11 + $0x20] sm:$0xff] }
 0x34a   : > { %v1207_v26 = vmul.f32 %v2374_v22, %v2602_v47  ;;  %v1593_v47 = vsel %vm1571_vm5, %v2148_v46, 0.0  ;;  %v1577_v55 = vpop.xlane.xlu0 %1576  ;;  %v1574_v56 = vpop.xlane.xlu1 %1573 }
 0x34b   : > { %2292 = vmatprep.mubr.msk.f32.mxu0 %vm425_vm0, %v1204_v20  ;;  %vm1934_vm14 = vcmp.gt.f32.partialorder %v1577_v55, 0.0  ;;  %vm1933_vm15 = vcmp.gt.f32.partialorder %v1574_v56, 0.0 }
 0x34c   : > { %v2376_v24 = vpop.eup %2375  ;;  %2293 = vmatmul.mubr.msk.f32.vlgmr.msra.gmra.mxu0 %vm425_vm0, %v1205_v21 }
 0x34d   : > { %v1206_v25 = vmul.f32 %v2376_v24, %v2360_v51  ;;  %2303 = vmatpush3.msra.mxu0 %v348_v3 }
 0x34e   : > { %2304 = vmatprep.subr.mxu0 %v347_v23  ;;  %v1580_v59 = vpop.xlane.xlu1 %1579 }
 0x34f   : > { %2299 = vmatprep.mubr.msk.f32.mxu1 %vm425_vm0, %v1206_v25  ;;  %2305 = vmatpush3.msra.mxu0 %v347_v23  ;;  %vm1935_vm2 = vcmp.gt.f32.partialorder %v1580_v59, 0.0  ;;  %v1543_v23 = vld [vmem:[%s2697_s11 + $0x38] sm:$0xff] }
 0x350   : > { %v2378_v28 = vpop.eup %2377  ;;  %2300 = vmatmul.mubr.msk.f32.vlgmr.msra.gmra.mxu1 %vm425_vm0, %v1207_v26  ;;  %v1542_v26 = vld [vmem:[%s2697_s11 + $0x30] sm:$0xff] }
 0x351   : > { %v2380_v29 = vpop.eup %2379  ;;  %v1209_v11 = vmul.f32 %v2378_v28, %v2610_v54  ;;  %2310 = vmatpush3.msra.mxu1 %v350_v4 }
 0x352   : > { %v1208_v30 = vmul.f32 %v2380_v29, %v2608_v53  ;;  %2311 = vmatprep.subr.mxu1 %v349_v27 }
 0x353   : > { %2312 = vmatpush3.msra.mxu1 %v349_v27 }
 0x354   : > { %v2382_v31 = vpop.eup %2381  ;;  %2306 = vmatprep.mubr.msk.f32.mxu0 %vm425_vm0, %v1208_v30 }
 0x355   : > { %v2384_v32 = vpop.eup %2383  ;;  %2307 = vmatmul.mubr.msk.f32.vlgmr.msra.gmra.mxu0 %vm425_vm0, %v1209_v11  ;;  %v1211_v33 = vmul.f32 %v2382_v31, %v2618_v58  ;;  %v1537_v58 = vld [vmem:[%s2697_s11 + $0x8] sm:$0xff] }
 0x356   : > { %v1210_v34 = vmul.f32 %v2384_v32, %v2616_v57  ;;  %2320 = vmatprep.mubr.msk.f32.mxu0 %vm1571_vm5, %v2141_v36 }
 0x358   : > { %2313 = vmatprep.mubr.msk.f32.mxu1 %vm425_vm0, %v1210_v34 }
 0x359   : > { %2314 = vmatmul.mubr.msk.f32.vlgmr.msra.gmra.mxu1 %vm425_vm0, %v1211_v33  ;;  %vm1550_vm0 = vcmp.eq.s32.totalorder %v1546_v38, %v2437_v0  ;;  %v2145_v0 = vsel %vm1551_vm8, 1.0, %v2393_v14 }
 0x35a   : > { %2327 = vmatprep.mubr.msk.f32.mxu1 %vm1571_vm5, %v2143_v37  ;;  %v2144_v41 = vsel %vm1550_vm0, 1.0, %v2393_v14  ;;  %v1584_v45 = vsel %vm1571_vm5, %v2145_v0, 0.0 }
 0x35b   : > { %v1581_v42 = vsel %vm1571_vm5, %v2144_v41, 0.0  ;;  %1585 = vadd.xlane.f32.xlu1 %v1584_v45 }
 0x35c   : > { %1582 = vadd.xlane.f32.xlu0 %v1581_v42 }
 0x35f   : > { %1591 = vadd.xlane.f32.xlu1 %v1590_v48 }
 0x360   : > { %1588 = vadd.xlane.f32.xlu0 %v1587_v44 }
 0x364   : > { %1594 = vadd.xlane.f32.xlu0 %v1593_v47 }
 0x3e4   : > { %v1586_v7 = vpop.xlane.xlu1 %1585 }
 0x3e5   : > { %v1583_v57 = vpop.xlane.xlu0 %1582  ;;  %vm1937_vm4 = vcmp.gt.f32.partialorder %v1586_v7, 0.0 }
 0x3e6   : > { %vm1936_vm3 = vcmp.gt.f32.partialorder %v1583_v57, 0.0 }
 0x3e8   : > { %v1592_v21 = vpop.xlane.xlu1 %1591 }
 0x3e9   : > { %v1589_v3 = vpop.xlane.xlu0 %1588  ;;  %vm1939_vm6 = vcmp.gt.f32.partialorder %v1592_v21, 0.0 }
 0x3ea   : > { %vm1938_vm1 = vcmp.gt.f32.partialorder %v1589_v3, 0.0 }
 0x3ed   : > { %v1595_v17 = vpop.xlane.xlu0 %1594 }
 0x40c   : > { %v2294_v49 = vpop.f32.mrf.mxu0 }
 0x40d   : > { %2316 = vmatprep.subr.msk.mxu0 %vm1602_vm13, %v2294_v49 }
 0x40e   : > { %v1284_v9 = vpop.f32.mrf.mxu0  ;;  %2317 = vmatpush3.msk.msra.mxu0 %vm1602_vm13, %v2294_v49 }
 0x40f   : > { %2318 = vmatprep.subr.mxu0 %v1284_v9 }
 0x410   : > { %v2301_v50 = vpop.f32.mrf.mxu1  ;;  %2319 = vmatpush3.msra.mxu0 %v1284_v9 }
 0x411   : > { %2323 = vmatprep.subr.msk.mxu1 %vm1602_vm13, %v2301_v50  ;;  %2321 = vmatmul.mubr.msk.f32.vlgmr.msra.gmra.mxu0 %vm1571_vm5, %v2142_v10 }
 0x412   : > { %v1365_v14 = vpop.f32.mrf.mxu1  ;;  %2324 = vmatpush3.msk.msra.mxu1 %vm1602_vm13, %v2301_v50  ;;  %2334 = vmatprep.mubr.msk.f32.mxu0 %vm1571_vm5, %v2145_v0 }
 0x413   : > { %2325 = vmatprep.subr.mxu1 %v1365_v14 }
 0x414   : > { %2326 = vmatpush3.msra.mxu1 %v1365_v14 }
 0x415   : > { %v2308_v51 = vpop.f32.mrf.mxu0  ;;  %2328 = vmatmul.mubr.msk.f32.vlgmr.msra.gmra.mxu1 %vm1571_vm5, %v2144_v41 }
 0x416   : > { %2330 = vmatprep.subr.msk.mxu0 %vm1602_vm13, %v2308_v51  ;;  %2341 = vmatprep.mubr.msk.f32.mxu1 %vm1571_vm5, %v2147_v8 }
 0x417   : > { %v1446_v52 = vpop.f32.mrf.mxu0  ;;  %2331 = vmatpush3.msk.msra.mxu0 %vm1602_vm13, %v2308_v51 }
 0x418   : > { %2332 = vmatprep.subr.mxu0 %v1446_v52 }
 0x419   : > { %v2315_v53 = vpop.f32.mrf.mxu1  ;;  %2333 = vmatpush3.msra.mxu0 %v1446_v52 }
 0x41a   : > { %2337 = vmatprep.subr.msk.mxu1 %vm1602_vm13, %v2315_v53  ;;  %2335 = vmatmul.mubr.msk.f32.vlgmr.msra.gmra.mxu0 %vm1571_vm5, %v2146_v43 }
 0x41b   : > { %v1527_v54 = vpop.f32.mrf.mxu1  ;;  %2338 = vmatpush3.msk.msra.mxu1 %vm1602_vm13, %v2315_v53 }
 0x41c   : > { %2339 = vmatprep.subr.mxu1 %v1527_v54 }
 0x41d   : > { %2340 = vmatpush3.msra.mxu1 %v1527_v54 }
 0x41e   : > { %2342 = vmatmul.mubr.msk.f32.vlgmr.msra.gmra.mxu1 %vm1571_vm5, %v2148_v46  ;;  %vm1940_vm5 = vcmp.gt.f32.partialorder %v1595_v17, 0.0 }
 0x4d1   : > { %v2322_v60 = vpop.f32.mrf.mxu0 }
 0x4d2   : > { %v1958_v62 = vsel %vm1934_vm14, %v2322_v60, %v1537_v58 }
 0x4d3   : > { %1966 = vst.msk [vmem:[%s2704_s14 + $0x8] sm:$0xff] %vm750_vm9, %v1958_v62  ;;  %v1672_v63 = vpop.f32.mrf.mxu0 }
 0x4d4   : > { %v1957_v4 = vsel %vm1933_vm15, %v1672_v63, %v1536_v61 }
 0x4d5   : > { %1965 = vst.msk [vmem:[%s2704_s14] sm:$0xff] %vm750_vm9, %v1957_v4  ;;  %v2329_v5 = vpop.f32.mrf.mxu1 }
 0x4d6   : > { %v1960_v15 = vsel %vm1936_vm3, %v2329_v5, %v1539_v2 }
 0x4d7   : > { %1968 = vst.msk [vmem:[%s2704_s14 + $0x18] sm:$0xff] %vm750_vm9, %v1960_v15  ;;  %v1756_v13 = vpop.f32.mrf.mxu1 }
 0x4d8   : > { %v1959_v16 = vsel %vm1935_vm2, %v1756_v13, %v1538_v6 }
 0x4d9   : > { %1967 = vst.msk [vmem:[%s2704_s14 + $0x10] sm:$0xff] %vm750_vm9, %v1959_v16 }
 0x4da   : > { %v2336_v18 = vpop.f32.mrf.mxu0 }
 0x4db   : > { %v1962_v20 = vsel %vm1938_vm1, %v2336_v18, %v1541_v12 }
 0x4dc   : > { %1970 = vst.msk [vmem:[%s2704_s14 + $0x28] sm:$0xff] %vm750_vm9, %v1962_v20  ;;  %v1840_v22 = vpop.f32.mrf.mxu0 }
 0x4dd   : > { %v1961_v24 = vsel %vm1937_vm4, %v1840_v22, %v1540_v19 }
 0x4de   : > { %1969 = vst.msk [vmem:[%s2704_s14 + $0x20] sm:$0xff] %vm750_vm9, %v1961_v24  ;;  %v2343_v25 = vpop.f32.mrf.mxu1 }
 0x4df   : > { %v1964_v27 = vsel %vm1940_vm5, %v2343_v25, %v1543_v23 }
 0x4e0   : > { %1972 = vst.msk [vmem:[%s2704_s14 + $0x38] sm:$0xff] %vm750_vm9, %v1964_v27  ;;  %v1924_v28 = vpop.f32.mrf.mxu1 }
 0x4e1   : > { %v1963_v29 = vsel %vm1939_vm6, %v1924_v28, %v1542_v26 }
 0x4e2   : > { %1971 = vst.msk [vmem:[%s2704_s14 + $0x30] sm:$0xff] %vm750_vm9, %v1963_v29 }
 0x4e3 PF: > { %s15_s18 = sadd.s32 1, %s2391_s18  }
 0x4e4   : > { %p12_p4 = scmp.ge.s32.totalorder %s15_s18, 4  }
 0x4e6   :  { %14 = sbr.rel (!%p12_p4) target bundleno = 1 (0x1), region = 82 }

</bundles_post_ra>
